<compile_context>
chip_gen: v6e
topology: v6e:2x2x1
jax: 0.10.0
libtpu: 0.0.40
codegen_flags: <defaults>
</compile_context>

<pallas_src>
import jax
import jax.numpy as jnp
from jax.experimental import pallas as pl
from jax.experimental.pallas import tpu as pltpu

DIMS = [237, 400, 200, 50, 1]
H1P, H2P, H3P = 512, 256, 128   # lane-dense padded hidden widths
B_PACK = 512                    # packed-bias row width (>= H1P, multiple of 128)
TB_DEFAULT = 1024               # default batch tile (amortizes per-step overhead)


def _round_up(x, m):
    return (x + m - 1) // m * m


def gfp_mlp_kernel(x_ref, w1_ref, w2_ref, w3_ref, w4_ref, b_ref, o_ref):
    # x_ref: (TB, 237) f32 ; w1/w2/w3: bf16 (in, out) padded lane-dense ;
    # w4_ref: (1, 128) f32 row ; b_ref: (4, 512) f32 packed biases.
    x = x_ref[...].astype(jnp.bfloat16)

    h = jnp.dot(x, w1_ref[...], preferred_element_type=jnp.float32)          # (TB, 512)
    h = jnp.maximum(h + b_ref[0:1, 0:H1P], 0.0).astype(jnp.bfloat16)

    h = jnp.dot(h, w2_ref[...], preferred_element_type=jnp.float32)          # (TB, 256)
    h = jnp.maximum(h + b_ref[1:2, 0:H2P], 0.0).astype(jnp.bfloat16)

    h = jnp.dot(h, w3_ref[...], preferred_element_type=jnp.float32)          # (TB, 128)
    h = jnp.maximum(h + b_ref[2:3, 0:H3P], 0.0)                              # f32

    # Layer 4 (50 -> 1) on the VPU/XLU: multiply by padded weight row, lane-reduce.
    out = jnp.sum(h * w4_ref[...], axis=-1, keepdims=True) + b_ref[3:4, 0:1]
    o_ref[...] = out.astype(o_ref.dtype)


def init_params(key):
    """torch.nn.Linear-style init (uniform +-1/sqrt(fan_in)); weights stored (in, out)."""
    ws, bs = [], []
    for i in range(4):
        fan_in, fan_out = DIMS[i], DIMS[i + 1]
        key, kw, kb = jax.random.split(key, 3)
        bound = fan_in ** -0.5
        ws.append(jax.random.uniform(kw, (fan_in, fan_out), jnp.float32, -bound, bound))
        bs.append(jax.random.uniform(kb, (fan_out,), jnp.float32, -bound, bound))
    return ws, bs


def pack_params(ws, bs):
    """Pack params for the kernel: zero-padded lane-dense bf16 weights, f32 last row,
    and all biases concatenated into one (4, 512) f32 array (single DMA)."""
    w1 = jnp.zeros((DIMS[0], H1P), jnp.float32).at[:, :DIMS[1]].set(ws[0])
    w2 = jnp.zeros((H1P, H2P), jnp.float32).at[:DIMS[1], :DIMS[2]].set(ws[1])
    w3 = jnp.zeros((H2P, H3P), jnp.float32).at[:DIMS[2], :DIMS[3]].set(ws[2])
    w4 = jnp.zeros((1, H3P), jnp.float32).at[0, :DIMS[3]].set(ws[3][:, 0])
    b_packed = jnp.zeros((4, B_PACK), jnp.float32)
    for i, b in enumerate(bs):
        b_packed = b_packed.at[i, :b.shape[0]].set(b)
    return (w1.astype(jnp.bfloat16), w2.astype(jnp.bfloat16),
            w3.astype(jnp.bfloat16), w4, b_packed)


def gfp_reward(x, packed, block_b=TB_DEFAULT):
    """x: (B, 237) float array.  packed: output of pack_params."""
    w1, w2, w3, w4, bp = packed
    B = x.shape[0]

    # Batch tile: multiple of 16 (bf16 sublane packing / (8,128) rule), capped so
    # large batches get at least 2 grid steps for the v7x two-TensorCore split.
    block_b = max(16, _round_up(block_b, 16))
    Bp16 = _round_up(B, 16)
    tb = min(block_b, Bp16)
    if Bp16 >= 256 and pl.cdiv(Bp16, tb) < 2:
        tb = _round_up(pl.cdiv(Bp16, 2), 16)
    n_tiles = pl.cdiv(B, tb)

    flops = 2 * B * (DIMS[0] * H1P + H1P * H2P + H2P * H3P + H3P)
    bytes_accessed = (B * DIMS[0] * 4                                  # x (f32)
                      + 2 * (DIMS[0] * H1P + H1P * H2P + H2P * H3P)    # bf16 weights
                      + 4 * H3P + 4 * 4 * B_PACK                       # w4 row + biases
                      + 4 * B)                                         # out (f32)

    out = pl.pallas_call(
        gfp_mlp_kernel,
        out_shape=jax.ShapeDtypeStruct((B, DIMS[-1]), jnp.float32),
        grid=(n_tiles,),
        in_specs=[
            pl.BlockSpec((tb, DIMS[0]), lambda i: (i, 0)),   # x: tiled over batch
            pl.BlockSpec(w1.shape, lambda i: (0, 0)),        # weights: VMEM-resident
            pl.BlockSpec(w2.shape, lambda i: (0, 0)),
            pl.BlockSpec(w3.shape, lambda i: (0, 0)),
            pl.BlockSpec(w4.shape, lambda i: (0, 0)),
            pl.BlockSpec(bp.shape, lambda i: (0, 0)),        # packed biases: resident
        ],
        out_specs=pl.BlockSpec((tb, DIMS[-1]), lambda i: (i, 0)),
        compiler_params=pltpu.CompilerParams(
            dimension_semantics=("parallel",),     # megacore-shard the batch on v7x
            vmem_limit_bytes=32 << 20,             # headroom-safe on v7x's 64 MiB VMEM
        ),
        cost_estimate=pl.CostEstimate(
            flops=flops, transcendentals=0, bytes_accessed=bytes_accessed),
    )(x, w1, w2, w3, w4, bp)

    return out


def gfp_reward_ref(x, ws, bs):
    """Precision-matched reference (bf16 operands, f32 accumulate/bias/ReLU;
    final 50->1 layer in f32 like the kernel's VPU path)."""
    h = x
    for i in range(3):
        a = h.astype(jnp.bfloat16).astype(jnp.float32)
        w = ws[i].astype(jnp.bfloat16).astype(jnp.float32)
        h = jnp.maximum(jnp.dot(a, w, preferred_element_type=jnp.float32)
                        + bs[i][None, :], 0.0)
    return jnp.dot(h, ws[3], preferred_element_type=jnp.float32) + bs[3][None, :]


if __name__ == "__main__":
    key = jax.random.PRNGKey(0)
    key, kx1, kx2 = jax.random.split(key, 3)

    ws, bs = init_params(key)
    packed = pack_params(ws, bs)

    # Test 1: small single-tile batch.
    B1 = 16
    x1 = jax.random.normal(kx1, (B1, DIMS[0]), dtype=jnp.float32)
    out1 = jax.block_until_ready(gfp_reward(x1, packed))
    ref1 = gfp_reward_ref(x1, ws, bs)
    assert out1.shape == (B1, 1), out1.shape
    assert jnp.allclose(out1, ref1, atol=1e-2, rtol=1e-2), "mismatch vs reference (B=16)"

    # Test 2: non-multiple batch with a small tile -> multi-step grid, resident
    # weights reused across iterations, ragged final tile handled by Pallas.
    B2 = 200
    x2 = jax.random.normal(kx2, (B2, DIMS[0]), dtype=jnp.float32)
    out2 = jax.block_until_ready(gfp_reward(x2, packed, block_b=64))
    ref2 = gfp_reward_ref(x2, ws, bs)
    assert out2.shape == (B2, 1), out2.shape
    assert jnp.allclose(out2, ref2, atol=1e-2, rtol=1e-2), "mismatch vs reference (B=200)"

    print("KERNEL_OK")
</pallas_src>

<mosaic_0001>
module attributes {stable_mosaic.version = 11 : i64} {
  func.func @gfp_mlp_kernel(%arg0: i32, %arg1: memref<16x237xf32, #tpu.memory_space<vmem>>, %arg2: memref<237x512xbf16, #tpu.memory_space<vmem>>, %arg3: memref<512x256xbf16, #tpu.memory_space<vmem>>, %arg4: memref<256x128xbf16, #tpu.memory_space<vmem>>, %arg5: memref<1x128xf32, #tpu.memory_space<vmem>>, %arg6: memref<4x512xf32, #tpu.memory_space<vmem>>, %arg7: memref<16x1xf32, #tpu.memory_space<vmem>>) attributes {dimension_semantics = [#tpu.dimension_semantics<parallel>], iteration_bounds = array<i64: 1>, scalar_prefetch = 0 : i64, scratch_operands = 0 : i64, tpu.core_type = #tpu.core_type<tc>, window_params = [{transform_indices = @transform_0, window_bounds = array<i64: 16, 237>}, {pipeline_mode = #tpu.pipeline_mode<synchronous>, transform_indices = @transform_1, window_bounds = array<i64: 237, 512>}, {pipeline_mode = #tpu.pipeline_mode<synchronous>, transform_indices = @transform_2, window_bounds = array<i64: 512, 256>}, {pipeline_mode = #tpu.pipeline_mode<synchronous>, transform_indices = @transform_3, window_bounds = array<i64: 256, 128>}, {pipeline_mode = #tpu.pipeline_mode<synchronous>, transform_indices = @transform_4, window_bounds = array<i64: 1, 128>}, {pipeline_mode = #tpu.pipeline_mode<synchronous>, transform_indices = @transform_5, window_bounds = array<i64: 4, 512>}, {transform_indices = @transform_6, window_bounds = array<i64: 16, 1>}]} {
    %c0 = arith.constant 0 : index
    %c0_0 = arith.constant 0 : index
    %0 = vector.load %arg1[%c0, %c0_0] : memref<16x237xf32, #tpu.memory_space<vmem>>, vector<16x237xf32>
    %1 = arith.truncf %0 : vector<16x237xf32> to vector<16x237xbf16>
    %c0_1 = arith.constant 0 : index
    %c0_2 = arith.constant 0 : index
    %2 = vector.load %arg2[%c0_1, %c0_2] : memref<237x512xbf16, #tpu.memory_space<vmem>>, vector<237x512xbf16>
    %cst = arith.constant dense<0.000000e+00> : vector<16x512xf32>
    %3 = tpu.matmul %1, %2, %cst {dimension_numbers = #tpu.dot_dimension_numbers<[1], [0], [0], [1], [0, 0, 1, 1], [], []>} : vector<16x237xbf16>, vector<237x512xbf16>, vector<16x512xf32> -> vector<16x512xf32>
    %c0_3 = arith.constant 0 : index
    %c0_4 = arith.constant 0 : index
    %4 = vector.load %arg6[%c0_3, %c0_4] : memref<4x512xf32, #tpu.memory_space<vmem>>, vector<1x512xf32>
    %5 = vector.broadcast %4 : vector<1x512xf32> to vector<16x512xf32>
    %6 = arith.addf %3, %5 : vector<16x512xf32>
    %cst_5 = arith.constant 0.000000e+00 : f32
    %7 = vector.broadcast %cst_5 : f32 to vector<16x512xf32>
    %8 = arith.maximumf %6, %7 : vector<16x512xf32>
    %9 = arith.truncf %8 : vector<16x512xf32> to vector<16x512xbf16>
    %c0_6 = arith.constant 0 : index
    %c0_7 = arith.constant 0 : index
    %10 = vector.load %arg3[%c0_6, %c0_7] : memref<512x256xbf16, #tpu.memory_space<vmem>>, vector<512x256xbf16>
    %cst_8 = arith.constant dense<0.000000e+00> : vector<16x256xf32>
    %11 = tpu.matmul %9, %10, %cst_8 {dimension_numbers = #tpu.dot_dimension_numbers<[1], [0], [0], [1], [0, 0, 1, 1], [], []>} : vector<16x512xbf16>, vector<512x256xbf16>, vector<16x256xf32> -> vector<16x256xf32>
    %c1 = arith.constant 1 : index
    %c0_9 = arith.constant 0 : index
    %12 = vector.load %arg6[%c1, %c0_9] : memref<4x512xf32, #tpu.memory_space<vmem>>, vector<1x256xf32>
    %13 = vector.broadcast %12 : vector<1x256xf32> to vector<16x256xf32>
    %14 = arith.addf %11, %13 : vector<16x256xf32>
    %cst_10 = arith.constant 0.000000e+00 : f32
    %15 = vector.broadcast %cst_10 : f32 to vector<16x256xf32>
    %16 = arith.maximumf %14, %15 : vector<16x256xf32>
    %17 = arith.truncf %16 : vector<16x256xf32> to vector<16x256xbf16>
    %c0_11 = arith.constant 0 : index
    %c0_12 = arith.constant 0 : index
    %18 = vector.load %arg4[%c0_11, %c0_12] : memref<256x128xbf16, #tpu.memory_space<vmem>>, vector<256x128xbf16>
    %cst_13 = arith.constant dense<0.000000e+00> : vector<16x128xf32>
    %19 = tpu.matmul %17, %18, %cst_13 {dimension_numbers = #tpu.dot_dimension_numbers<[1], [0], [0], [1], [0, 0, 1, 1], [], []>} : vector<16x256xbf16>, vector<256x128xbf16>, vector<16x128xf32> -> vector<16x128xf32>
    %c2 = arith.constant 2 : index
    %c0_14 = arith.constant 0 : index
    %20 = vector.load %arg6[%c2, %c0_14] : memref<4x512xf32, #tpu.memory_space<vmem>>, vector<1x128xf32>
    %21 = vector.broadcast %20 : vector<1x128xf32> to vector<16x128xf32>
    %22 = arith.addf %19, %21 : vector<16x128xf32>
    %cst_15 = arith.constant 0.000000e+00 : f32
    %23 = vector.broadcast %cst_15 : f32 to vector<16x128xf32>
    %24 = arith.maximumf %22, %23 : vector<16x128xf32>
    %c0_16 = arith.constant 0 : index
    %c0_17 = arith.constant 0 : index
    %25 = vector.load %arg5[%c0_16, %c0_17] : memref<1x128xf32, #tpu.memory_space<vmem>>, vector<1x128xf32>
    %26 = vector.broadcast %25 : vector<1x128xf32> to vector<16x128xf32>
    %27 = arith.mulf %24, %26 : vector<16x128xf32>
    %cst_18 = arith.constant dense<0.000000e+00> : vector<16xf32>
    %28 = vector.multi_reduction <add>, %27, %cst_18 [1] : vector<16x128xf32> to vector<16xf32>
    %29 = vector.shape_cast %28 : vector<16xf32> to vector<16x1xf32>
    %c3 = arith.constant 3 : index
    %c0_19 = arith.constant 0 : index
    %30 = vector.load %arg6[%c3, %c0_19] : memref<4x512xf32, #tpu.memory_space<vmem>>, vector<1x1xf32>
    %31 = vector.broadcast %30 : vector<1x1xf32> to vector<16x1xf32>
    %32 = arith.addf %29, %31 : vector<16x1xf32>
    %c0_20 = arith.constant 0 : index
    %c0_21 = arith.constant 0 : index
    %33 = vector.load %arg7[%c0_20, %c0_21] : memref<16x1xf32, #tpu.memory_space<vmem>>, vector<16x1xf32>
    tpu.vector_store %arg7[%c0_20, %c0_21], %32 {strides = array<i32>} : memref<16x1xf32, #tpu.memory_space<vmem>>, vector<16x1xf32>,
    return
  }
  func.func @transform_0(%arg0: i32) -> (i32, i32) {
    %c0_i32 = arith.constant 0 : i32
    %c0_i32_0 = arith.constant 0 : i32
    return %arg0, %c0_i32 : i32, i32
  }
  func.func @transform_1(%arg0: i32) -> (i32, i32) {
    %c0_i32 = arith.constant 0 : i32
    %c0_i32_0 = arith.constant 0 : i32
    %c0_i32_1 = arith.constant 0 : i32
    return %c0_i32, %c0_i32_0 : i32, i32
  }
  func.func @transform_2(%arg0: i32) -> (i32, i32) {
    %c0_i32 = arith.constant 0 : i32
    %c0_i32_0 = arith.constant 0 : i32
    %c0_i32_1 = arith.constant 0 : i32
    return %c0_i32, %c0_i32_0 : i32, i32
  }
  func.func @transform_3(%arg0: i32) -> (i32, i32) {
    %c0_i32 = arith.constant 0 : i32
    %c0_i32_0 = arith.constant 0 : i32
    %c0_i32_1 = arith.constant 0 : i32
    return %c0_i32, %c0_i32_0 : i32, i32
  }
  func.func @transform_4(%arg0: i32) -> (i32, i32) {
    %c0_i32 = arith.constant 0 : i32
    %c0_i32_0 = arith.constant 0 : i32
    %c0_i32_1 = arith.constant 0 : i32
    return %c0_i32, %c0_i32_0 : i32, i32
  }
  func.func @transform_5(%arg0: i32) -> (i32, i32) {
    %c0_i32 = arith.constant 0 : i32
    %c0_i32_0 = arith.constant 0 : i32
    %c0_i32_1 = arith.constant 0 : i32
    return %c0_i32, %c0_i32_0 : i32, i32
  }
  func.func @transform_6(%arg0: i32) -> (i32, i32) {
    %c0_i32 = arith.constant 0 : i32
    %c0_i32_0 = arith.constant 0 : i32
    return %arg0, %c0_i32 : i32, i32
  }
}

</mosaic_0001>

<bundles_post_ra>
// kernel: tpu_custom_call.1
= control target key start
LH: loop header
LB: loop body
LE: loop exit
PB: predicated region body
PF: predicated region fallthrough
CT: control target
= control target key end

     0   :  { %11 = vsyncpa [#allocation3], 0  ;;  %s1859_s0 = inlined_call_operand.hbm [shape: f32[16,237], index: 0, kind: input, shape index: {}]   ;;  %s1860_s1 = inlined_call_operand.hbm [shape: bf16[237,512], index: 1, kind: input, shape index: {}]   ;;  %s1861_s2 = inlined_call_operand.hbm [shape: bf16[512,256], index: 2, kind: input, shape index: {}]   ;;  %s1862_s3 = inlined_call_operand.hbm [shape: bf16[256,128], index: 3, kind: input, shape index: {}]   ;;  %s1863_s4 = inlined_call_operand.vmem [shape: f32[1,128], index: 4, kind: input, shape index: {}]   ;;  %s1864_s5 = inlined_call_operand.hbm [shape: f32[4,512], index: 5, kind: input, shape index: {}]   ;;  %s1865_s6 = inlined_call_operand.vmem [shape: f32[16,1], index: 6, kind: output, shape index: {}]  }
   0x1   :  { %12 = vsyncpa [#allocation5], 0 }
   0x2   :  { %13 = vsyncpa [#allocation8], 0  ;;  %s1774_s21 = smov [#allocation4]   ;;  %s1775_s23 = smov [#allocation7]  }
   0x3   :  { %s31_s22 = sshll.u32 %s1774_s21, 4  ;;  %s55_s24 = sshll.u32 %s1775_s23, 4  ;;  %s32_s22 = int_to_ptr.vmem [resolvable:$true] %s31_s22  ;;  %s56_s24 = int_to_ptr.vmem [resolvable:$true] %s55_s24 }
   0x4   :  { %s1676_s25 = scalar_lea.vmem %s32_s22, 7680  ;;  %p1681_p1 = scmp.lt.s32.totalorder %s32_s22, %s32_s22 }
   0x5   :  { %p1677_p0 = scmp.ne.s32.totalorder %s32_s22, %s1676_s25  ;;  %p1682_p2 = scmp.lt.s32.totalorder %s1676_s25, %s1676_s25 }
   0x7   :  { %p1683_p3 = por %p1682_p2, %p1681_p1 }
   0x9   :  { %p1684_p4 = pnand %p1683_p3, %p1677_p0 }
   0xb   :  { %1687 = shalt.err (!%p1684_p4)
}
   0xc   :  { %s1776_s26 = smov 256   ;;  %s1777_s27 = smov 16  }
   0xd   :  { %37 = dma.hbm_to_vmem [thread:$0]  %s1860_s1, 7680, %s32_s22, [#allocation5], %s1776_s26, %s1776_s26, %s1777_s27  }
   0xe   :  { %s1696_s30 = scalar_lea.vmem %s56_s24, 2048  ;;  %p1701_p6 = scmp.lt.s32.totalorder %s56_s24, %s56_s24 }
   0xf   :  { %p1697_p5 = scmp.ne.s32.totalorder %s56_s24, %s1696_s30  ;;  %p1702_p7 = scmp.lt.s32.totalorder %s1696_s30, %s1696_s30 }
  0x11   :  { %p1703_p8 = por %p1702_p7, %p1701_p6 }
  0x13   :  { %p1704_p9 = pnand %p1703_p8, %p1697_p5 }
  0x15   :  { %1707 = shalt.err (!%p1704_p9)
}
  0x16   :  { %s1778_s7 = smov 64   ;;  %s1779_s8 = smov 4  }
  0x17   :  { %61 = dma.hbm_to_vmem [thread:$0]  %s1862_s3, 2048, %s56_s24, [#allocation8], %s1778_s7, %s1778_s7, %s1779_s8  }
  0x18   :  { %s1780_s11 = smov [#allocation2]   ;;  %s1781_s13 = smov [#allocation6]  }
  0x19   :  { %s19_s12 = sshll.u32 %s1780_s11, 4  ;;  %s43_s14 = sshll.u32 %s1781_s13, 4  ;;  %s20_s12 = int_to_ptr.vmem [resolvable:$true] %s19_s12  ;;  %s44_s14 = int_to_ptr.vmem [resolvable:$true] %s43_s14 }
  0x1a   :  { %s1716_s1 = scalar_lea.vmem %s20_s12, 512  ;;  %p1721_p11 = scmp.lt.s32.totalorder %s20_s12, %s20_s12 }
  0x1b   :  { %p1717_p10 = scmp.ne.s32.totalorder %s20_s12, %s1716_s1  ;;  %p1722_p12 = scmp.lt.s32.totalorder %s1716_s1, %s1716_s1 }
  0x1d   :  { %p1723_p13 = por %p1722_p12, %p1721_p11 }
  0x1f   :  { %p1724_p0 = pnand %p1723_p13, %p1717_p10 }
  0x21   :  { %1727 = shalt.err (!%p1724_p0)
}
  0x22   :  { %25 = dma.hbm_to_vmem [thread:$0]  %s1859_s0, 512, %s20_s12, [#allocation3], %s1776_s26, %s1776_s26, %s1777_s27  }
  0x23   :  { %s1736_s17 = scalar_lea.vmem %s44_s14, 8192  ;;  %p1741_p2 = scmp.lt.s32.totalorder %s44_s14, %s44_s14 }
  0x24   :  { %p1737_p1 = scmp.ne.s32.totalorder %s44_s14, %s1736_s17  ;;  %p1742_p3 = scmp.lt.s32.totalorder %s1736_s17, %s1736_s17 }
  0x26   :  { %p1743_p4 = por %p1742_p3, %p1741_p2 }
  0x28   :  { %p1744_p5 = pnand %p1743_p4, %p1737_p1 }
  0x2a   :  { %1747 = shalt.err (!%p1744_p5)
}
  0x2b   :  { %s1782_s3 = smov 128   ;;  %s1783_s18 = smov 8  }
  0x2c   :  { %49 = dma.hbm_to_vmem [thread:$0]  %s1861_s2, 8192, %s44_s14, [#allocation5], %s1782_s3, %s1782_s3, %s1783_s18  }
  0x2d   :  { %s1784_s21 = smov [#allocation9]  }
  0x2e   :  { %s70_s22 = sshll.u32 %s1784_s21, 4  ;;  %s71_s22 = int_to_ptr.vmem [resolvable:$true] %s70_s22 }
  0x2f   :  { %s1756_s23 = scalar_lea.vmem %s71_s22, 256  ;;  %p1761_p7 = scmp.lt.s32.totalorder %s71_s22, %s71_s22 }
  0x30   :  { %p1757_p6 = scmp.ne.s32.totalorder %s71_s22, %s1756_s23  ;;  %p1762_p8 = scmp.lt.s32.totalorder %s1756_s23, %s1756_s23 }
  0x32   :  { %p1763_p9 = por %p1762_p8, %p1761_p7 }
  0x34   :  { %p1764_p10 = pnand %p1763_p9, %p1757_p6 }
  0x36   :  { %1767 = shalt.err (!%p1764_p10)
}
  0x37   :  { %73 = dma.hbm_to_vmem [thread:$0]  %s1864_s5, 256, %s71_s22, [#allocation8]  }
  0x38   :  { %1768 = dma.done.wait [#allocation3], 512  }
  0x39   :  { %1769 = vsyncadd [#allocation3], 4294966784 }
  0x3a   :  { %1770 = dma.done.wait [#allocation5], 15872  }
  0x3b   :  { %1771 = vsyncadd [#allocation5], 4294951424 }
  0x3c   :  { %1772 = dma.done.wait [#allocation8], 2304  }
  0x3d   :  { %1773 = vsyncadd [#allocation8], 4294964992  ;;  %v1466_v0 = vld [vmem:[#allocation4 + $0xe4] ss:$16 sps:$4 sm:$0xff]   ;;  %v1468_v1 = vld [vmem:[#allocation4 + $0xec] ss:$16 sps:$4 sm:$0xff]  }
  0x3e   :  { %494 = vmatprep.subr.bf16.mxu0 %v1466_v0  ;;  %v1470_v2 = vld [vmem:[#allocation4 + $0xe0] ss:$16 sps:$4 sm:$0xff]   ;;  %v1471_v3 = vld [vmem:[#allocation4 + $0xe8] ss:$16 sps:$4 sm:$0xff]   ;;  %537 = vmatprep.subr.bf16.mxu1 %v1468_v1  ;;  %v1472_v4 = vld [vmem:[#allocation4 + $0xc4] ss:$16 sps:$4 sm:$0xff]  }
  0x3f   :  { %495 = vmatpush1.bf16.msra.mxu0 %v1470_v2  ;;  %538 = vmatpush1.bf16.msra.mxu1 %v1471_v3  ;;  %v1474_v5 = vld [vmem:[#allocation4 + $0xcc] ss:$16 sps:$4 sm:$0xff]   ;;  %v1476_v6 = vld [vmem:[#allocation4 + $0xc0] ss:$16 sps:$4 sm:$0xff]   ;;  %v1477_v7 = vld [vmem:[#allocation4 + $0xc8] ss:$16 sps:$4 sm:$0xff]  }
  0x40   :  { %496 = vmatprep.subr.bf16.mxu0 %v1472_v4  ;;  %539 = vmatprep.subr.bf16.mxu1 %v1474_v5  ;;  %v1478_v8 = vld [vmem:[#allocation4 + $0xa4] ss:$16 sps:$4 sm:$0xff]   ;;  %v1480_v9 = vld [vmem:[#allocation4 + $0xac] ss:$16 sps:$4 sm:$0xff]   ;;  %v1482_v10 = vld [vmem:[#allocation4 + $0xa0] ss:$16 sps:$4 sm:$0xff]  }
  0x41   :  { %v1483_v11 = vld [vmem:[#allocation4 + $0xa8] ss:$16 sps:$4 sm:$0xff]   ;;  %v1484_v12 = vld [vmem:[#allocation4 + $0x84] ss:$16 sps:$4 sm:$0xff]   ;;  %v1486_v13 = vld [vmem:[#allocation4 + $0x8c] ss:$16 sps:$4 sm:$0xff]  }
  0x42   :  { %v1488_v14 = vld [vmem:[#allocation4 + $0x80] ss:$16 sps:$4 sm:$0xff]   ;;  %v1489_v15 = vld [vmem:[#allocation4 + $0x88] ss:$16 sps:$4 sm:$0xff]   ;;  %v1490_v16 = vld [vmem:[#allocation4 + $0x64] ss:$16 sps:$4 sm:$0xff]  }
  0x43   :  { %497 = vmatpush1.bf16.msra.mxu0 %v1476_v6  ;;  %540 = vmatpush1.bf16.msra.mxu1 %v1477_v7  ;;  %v1492_v17 = vld [vmem:[#allocation4 + $0x6c] ss:$16 sps:$4 sm:$0xff]   ;;  %v1494_v18 = vld [vmem:[#allocation4 + $0x60] ss:$16 sps:$4 sm:$0xff]   ;;  %v1495_v19 = vld [vmem:[#allocation4 + $0x68] ss:$16 sps:$4 sm:$0xff]  }
  0x44   :  { %498 = vmatprep.subr.bf16.mxu0 %v1478_v8  ;;  %541 = vmatprep.subr.bf16.mxu1 %v1480_v9  ;;  %v1496_v20 = vld [vmem:[#allocation4 + $0x44] ss:$16 sps:$4 sm:$0xff]   ;;  %v1498_v21 = vld [vmem:[#allocation4 + $0x4c] ss:$16 sps:$4 sm:$0xff]   ;;  %v1500_v22 = vld [vmem:[#allocation4 + $0x40] ss:$16 sps:$4 sm:$0xff]  }
  0x45   :  { %vm478_vm0 = vcmask 1045504   ;;  %v1501_v23 = vld [vmem:[#allocation4 + $0x48] ss:$16 sps:$4 sm:$0xff]   ;;  %v1502_v24 = vld [vmem:[#allocation4 + $0x24] ss:$16 sps:$4 sm:$0xff]   ;;  %vm479_vm1 = vcmask 1046528  }
  0x46   :  { %v1504_v25 = vld [vmem:[#allocation4 + $0x2c] ss:$16 sps:$4 sm:$0xff]   ;;  %v1506_v26 = vld [vmem:[#allocation4 + $0x20] ss:$16 sps:$4 sm:$0xff]   ;;  %v1785_v27 = vmov 65535   ;;  %vm474_vm2 = vcmask 891904  }
  0x47   :  { %499 = vmatpush1.bf16.msra.mxu0 %v1482_v10  ;;  %542 = vmatpush1.bf16.msra.mxu1 %v1483_v11  ;;  %v480_v28 = vsel %vm478_vm0, 4294967295, %v1785_v27  ;;  %v1507_v29 = vld [vmem:[#allocation4 + $0x28] ss:$16 sps:$4 sm:$0xff]   ;;  %v1508_v30 = vld [vmem:[#allocation4 + $0x4] ss:$16 sps:$4 sm:$0xff]   ;;  %vm1277_vm3 = vcmask 7168  }
  0x48   :  { %500 = vmatprep.subr.bf16.mxu0 %v1484_v12  ;;  %543 = vmatprep.subr.bf16.mxu1 %v1486_v13  ;;  %v1510_v31 = vld [vmem:[#allocation4 + $0xc] ss:$16 sps:$4 sm:$0xff]   ;;  %v1514_v32 = vld [vmem:[#allocation4 + $0x1c4] ss:$16 sps:$4 sm:$0x7f]   ;;  %v481_v36 = vsel %vm479_vm1, %v480_v28, 0 }
  0x49   :  { %v1516_v33 = vld [vmem:[#allocation4 + $0x1cc] ss:$16 sps:$4 sm:$0x7f]   ;;  %v1512_v34 = vld [vmem:[#allocation4] ss:$16 sps:$4 sm:$0xff]   ;;  %v486_v39 = vand.u32 %v1514_v32, %v481_v36 }
  0x4a   :  { %v1513_v35 = vld [vmem:[#allocation4 + $0x8] ss:$16 sps:$4 sm:$0xff]   ;;  %v1518_v37 = vld [vmem:[#allocation4 + $0x1c0] ss:$16 sps:$4 sm:$0x7f]   ;;  %v492_v40 = vand.u32 %v1516_v33, %v481_v36 }
  0x4b   :  { %501 = vmatpush1.bf16.msra.mxu0 %v1488_v14  ;;  %544 = vmatpush1.bf16.msra.mxu1 %v1489_v15  ;;  %v1519_v38 = vld [vmem:[#allocation4 + $0x1c8] ss:$16 sps:$4 sm:$0x7f]   ;;  %v483_v41 = vand.u32 %v1518_v37, %v481_v36  ;;  %v1520_v43 = vld [vmem:[#allocation4 + $0x1a4] ss:$16 sps:$4 sm:$0xff]  }
  0x4c   :  { %502 = vmatprep.subr.bf16.mxu0 %v1490_v16  ;;  %545 = vmatprep.subr.bf16.mxu1 %v1492_v17  ;;  %v489_v42 = vand.u32 %v1519_v38, %v481_v36  ;;  %v1522_v44 = vld [vmem:[#allocation4 + $0x1ac] ss:$16 sps:$4 sm:$0xff]   ;;  %v1524_v45 = vld [vmem:[#allocation4 + $0x1a0] ss:$16 sps:$4 sm:$0xff]   ;;  %v1525_v46 = vld [vmem:[#allocation4 + $0x1a8] ss:$16 sps:$4 sm:$0xff]  }
  0x4d   :  { %v1526_v47 = vld [vmem:[#allocation4 + $0x184] ss:$16 sps:$4 sm:$0xff]   ;;  %v1528_v48 = vld [vmem:[#allocation4 + $0x18c] ss:$16 sps:$4 sm:$0xff]   ;;  %v1530_v49 = vld [vmem:[#allocation4 + $0x180] ss:$16 sps:$4 sm:$0xff]  }
  0x4e   :  { %v1531_v50 = vld [vmem:[#allocation4 + $0x188] ss:$16 sps:$4 sm:$0xff]   ;;  %v1532_v53 = vld [vmem:[#allocation4 + $0x164] ss:$16 sps:$4 sm:$0xff]   ;;  %v1534_v54 = vld [vmem:[#allocation4 + $0x16c] ss:$16 sps:$4 sm:$0xff]  }
  0x4f   :  { %503 = vmatpush1.bf16.msra.mxu0 %v1494_v18  ;;  %546 = vmatpush1.bf16.msra.mxu1 %v1495_v19  ;;  %v91_v51 = vld [vmem:[#allocation2 + $0x8] sm:$0xff]  ;;  %v93_v52 = vld [vmem:[#allocation2 + $0x18] sm:$0xff]  ;;  %v1536_v56 = vld [vmem:[#allocation4 + $0x160] ss:$16 sps:$4 sm:$0xff]  }
  0x50   :  { %504 = vmatprep.subr.bf16.mxu0 %v1496_v20  ;;  %547 = vmatprep.subr.bf16.mxu1 %v1498_v21  ;;  %v95_v55 = vpack.c.bf16 %v93_v52, %v91_v51  ;;  %v1537_v57 = vld [vmem:[#allocation4 + $0x168] ss:$16 sps:$4 sm:$0xff]   ;;  %v1538_v58 = vld [vmem:[#allocation4 + $0x144] ss:$16 sps:$4 sm:$0xff]   ;;  %v1540_v59 = vld [vmem:[#allocation4 + $0x14c] ss:$16 sps:$4 sm:$0xff]  }
  0x51   :  { %v1542_v60 = vld [vmem:[#allocation4 + $0x140] ss:$16 sps:$4 sm:$0xff]   ;;  %v1543_v61 = vld [vmem:[#allocation4 + $0x148] ss:$16 sps:$4 sm:$0xff]   ;;  %v1544_v62 = vld [vmem:[#allocation4 + $0x124] ss:$16 sps:$4 sm:$0xff]  }
  0x52   :  { %1347 = vmatprep.mubr.msk.bf16.mxu0 %vm474_vm2, %v95_v55  ;;  %1348 = vmatprep.mubr.msk.bf16.mxu1 %vm474_vm2, %v95_v55  ;;  %v1546_v63 = vld [vmem:[#allocation4 + $0x12c] ss:$16 sps:$4 sm:$0xff]   ;;  %v1548_v0 = vld [vmem:[#allocation4 + $0x120] ss:$16 sps:$4 sm:$0xff]   ;;  %v1549_v1 = vld [vmem:[#allocation4 + $0x128] ss:$16 sps:$4 sm:$0xff]  }
  0x53   :  { %505 = vmatpush1.bf16.msra.mxu0 %v1500_v22  ;;  %548 = vmatpush1.bf16.msra.mxu1 %v1501_v23  ;;  %v1550_v2 = vld [vmem:[#allocation4 + $0x104] ss:$16 sps:$4 sm:$0xff]   ;;  %v1552_v3 = vld [vmem:[#allocation4 + $0x10c] ss:$16 sps:$4 sm:$0xff]   ;;  %v1554_v4 = vld [vmem:[#allocation4 + $0x100] ss:$16 sps:$4 sm:$0xff]  }
  0x54   :  { %506 = vmatprep.subr.bf16.mxu0 %v1502_v24  ;;  %549 = vmatprep.subr.bf16.mxu1 %v1504_v25  ;;  %v1555_v5 = vld [vmem:[#allocation4 + $0x108] ss:$16 sps:$4 sm:$0xff]   ;;  %v90_v6 = vld [vmem:[#allocation2] sm:$0xff]  ;;  %v92_v7 = vld [vmem:[#allocation2 + $0x10] sm:$0xff] }
  0x55   :  { %v1558_v8 = vld [vmem:[#allocation6 + $0x74] ss:$8 sps:$4 sm:$0xff]   ;;  %v94_v10 = vpack.c.bf16 %v92_v7, %v90_v6  ;;  %v1556_v11 = vld [vmem:[#allocation6 + $0x70] ss:$8 sps:$4 sm:$0xff]   ;;  %v1564_v13 = vld [vmem:[#allocation6 + $0x64] ss:$8 sps:$4 sm:$0xff]  }
  0x56   :  { %v1561_v9 = vld [vmem:[#allocation6 + $0x174] ss:$8 sps:$4 sm:$0xff]   ;;  %v1559_v12 = vld [vmem:[#allocation6 + $0x170] ss:$8 sps:$4 sm:$0xff]   ;;  %v1567_v14 = vld [vmem:[#allocation6 + $0x164] ss:$8 sps:$4 sm:$0xff]  }
  0x57   :  { %507 = vmatpush1.bf16.msra.mxu0 %v1506_v26  ;;  %550 = vmatpush1.bf16.msra.mxu1 %v1507_v29  ;;  %v1562_v15 = vld [vmem:[#allocation6 + $0x60] ss:$8 sps:$4 sm:$0xff]   ;;  %v1570_v17 = vld [vmem:[#allocation6 + $0x54] ss:$8 sps:$4 sm:$0xff]   ;;  %v1568_v19 = vld [vmem:[#allocation6 + $0x50] ss:$8 sps:$4 sm:$0xff]  }
  0x58   :  { %508 = vmatprep.subr.bf16.mxu0 %v1508_v30  ;;  %551 = vmatprep.subr.bf16.mxu1 %v1510_v31  ;;  %v1565_v16 = vld [vmem:[#allocation6 + $0x160] ss:$8 sps:$4 sm:$0xff]   ;;  %v1573_v18 = vld [vmem:[#allocation6 + $0x154] ss:$8 sps:$4 sm:$0xff]   ;;  %v1571_v20 = vld [vmem:[#allocation6 + $0x150] ss:$8 sps:$4 sm:$0xff]  }
  0x59   :  { %v1576_v21 = vld [vmem:[#allocation6 + $0x44] ss:$8 sps:$4 sm:$0xff]   ;;  %v1574_v23 = vld [vmem:[#allocation6 + $0x40] ss:$8 sps:$4 sm:$0xff]   ;;  %v1582_v25 = vld [vmem:[#allocation6 + $0x34] ss:$8 sps:$4 sm:$0xff]  }
  0x5a   :  { %v1579_v22 = vld [vmem:[#allocation6 + $0x144] ss:$8 sps:$4 sm:$0xff]   ;;  %v1577_v24 = vld [vmem:[#allocation6 + $0x140] ss:$8 sps:$4 sm:$0xff]   ;;  %v1585_v26 = vld [vmem:[#allocation6 + $0x134] ss:$8 sps:$4 sm:$0xff]  }
  0x5b   :  { %509 = vmatpush1.bf16.msra.mxu0 %v1512_v34  ;;  %552 = vmatpush1.bf16.msra.mxu1 %v1513_v35  ;;  %v1580_v27 = vld [vmem:[#allocation6 + $0x30] ss:$8 sps:$4 sm:$0xff]   ;;  %v1588_v29 = vld [vmem:[#allocation6 + $0x24] ss:$8 sps:$4 sm:$0xff]   ;;  %v1586_v31 = vld [vmem:[#allocation6 + $0x20] ss:$8 sps:$4 sm:$0xff]  }
  0x5c   :  { %512 = vmatprep.subr.bf16.mxu0 %v486_v39  ;;  %555 = vmatprep.subr.bf16.mxu1 %v492_v40  ;;  %v1583_v28 = vld [vmem:[#allocation6 + $0x130] ss:$8 sps:$4 sm:$0xff]   ;;  %v1591_v30 = vld [vmem:[#allocation6 + $0x124] ss:$8 sps:$4 sm:$0xff]   ;;  %v1589_v32 = vld [vmem:[#allocation6 + $0x120] ss:$8 sps:$4 sm:$0xff]  }
  0x5d   :  { %v1594_v33 = vld [vmem:[#allocation6 + $0x14] ss:$8 sps:$4 sm:$0xff]   ;;  %v1592_v35 = vld [vmem:[#allocation6 + $0x10] ss:$8 sps:$4 sm:$0xff]   ;;  %v1600_v37 = vld [vmem:[#allocation6 + $0x4] ss:$8 sps:$4 sm:$0xff]  }
  0x5e   :  { %v1597_v34 = vld [vmem:[#allocation6 + $0x114] ss:$8 sps:$4 sm:$0xff]   ;;  %v1595_v36 = vld [vmem:[#allocation6 + $0x110] ss:$8 sps:$4 sm:$0xff]   ;;  %v1603_v38 = vld [vmem:[#allocation6 + $0x104] ss:$8 sps:$4 sm:$0xff]  }
  0x5f   :  { %513 = vmatpush2.bf16.msra.mxu0 %v483_v41  ;;  %556 = vmatpush2.bf16.msra.mxu1 %v489_v42  ;;  %v1598_v39 = vld [vmem:[#allocation6] ss:$8 sps:$4 sm:$0xff]   ;;  %v1606_v41 = vld [vmem:[#allocation6 + $0xf4] ss:$8 sps:$4 sm:$0xff]   ;;  %v1616_v51 = vld [vmem:[#allocation6 + $0xd0] ss:$8 sps:$4 sm:$0xff]  }
  0x60   :  { %514 = vmatprep.subr.bf16.mxu0 %v1520_v43  ;;  %557 = vmatprep.subr.bf16.mxu1 %v1522_v44  ;;  %v1601_v40 = vld [vmem:[#allocation6 + $0x100] ss:$8 sps:$4 sm:$0xff]   ;;  %v1609_v42 = vld [vmem:[#allocation6 + $0x1f4] ss:$8 sps:$4 sm:$0xff]   ;;  %v1604_v43 = vld [vmem:[#allocation6 + $0xf0] ss:$8 sps:$4 sm:$0xff]  }
  0x61   :  { %v1607_v44 = vld [vmem:[#allocation6 + $0x1f0] ss:$8 sps:$4 sm:$0xff]   ;;  %v1622_v55 = vld [vmem:[#allocation6 + $0xc0] ss:$8 sps:$4 sm:$0xff]   ;;  %v1651_v6 = vld [vmem:[#allocation6 + $0x184] ss:$8 sps:$4 sm:$0xff]  }
  0x62   :  { %v1619_v52 = vld [vmem:[#allocation6 + $0x1d0] ss:$8 sps:$4 sm:$0xff]   ;;  %v1646_v7 = vld [vmem:[#allocation6 + $0x80] ss:$8 sps:$4 sm:$0xff]  }
  0x63   :  { %515 = vmatpush2.bf16.msra.mxu0 %v1524_v45  ;;  %558 = vmatpush2.bf16.msra.mxu1 %v1525_v46  ;;  %v1612_v45 = vld [vmem:[#allocation6 + $0xe4] ss:$8 sps:$4 sm:$0xff]  }
  0x64   :  { %516 = vmatprep.subr.bf16.mxu0 %v1526_v47  ;;  %559 = vmatprep.subr.bf16.mxu1 %v1528_v48  ;;  %v1615_v46 = vld [vmem:[#allocation6 + $0x1e4] ss:$8 sps:$4 sm:$0xff]   ;;  %v1610_v47 = vld [vmem:[#allocation6 + $0xe0] ss:$8 sps:$4 sm:$0xff]  }
  0x65   :  { %v1613_v48 = vld [vmem:[#allocation6 + $0x1e0] ss:$8 sps:$4 sm:$0xff]  }
  0x67   :  { %517 = vmatpush2.bf16.msra.mxu0 %v1530_v49  ;;  %560 = vmatpush2.bf16.msra.mxu1 %v1531_v50  ;;  %v1618_v49 = vld [vmem:[#allocation6 + $0xd4] ss:$8 sps:$4 sm:$0xff]  }
  0x68   :  { %518 = vmatprep.subr.bf16.mxu0 %v1532_v53  ;;  %561 = vmatprep.subr.bf16.mxu1 %v1534_v54  ;;  %v1621_v50 = vld [vmem:[#allocation6 + $0x1d4] ss:$8 sps:$4 sm:$0xff]   ;;  %v1624_v53 = vld [vmem:[#allocation6 + $0xc4] ss:$8 sps:$4 sm:$0xff]  }
  0x69   :  { %v1627_v54 = vld [vmem:[#allocation6 + $0x1c4] ss:$8 sps:$4 sm:$0xff]  }
  0x6b   :  { %519 = vmatpush2.bf16.msra.mxu0 %v1536_v56  ;;  %562 = vmatpush2.bf16.msra.mxu1 %v1537_v57  ;;  %v1625_v56 = vld [vmem:[#allocation6 + $0x1c0] ss:$8 sps:$4 sm:$0xff]   ;;  %v1630_v57 = vld [vmem:[#allocation6 + $0xb4] ss:$8 sps:$4 sm:$0xff]  }
  0x6c   :  { %520 = vmatprep.subr.bf16.mxu0 %v1538_v58  ;;  %563 = vmatprep.subr.bf16.mxu1 %v1540_v59  ;;  %v1633_v58 = vld [vmem:[#allocation6 + $0x1b4] ss:$8 sps:$4 sm:$0xff]   ;;  %v1628_v59 = vld [vmem:[#allocation6 + $0xb0] ss:$8 sps:$4 sm:$0xff]  }
  0x6f   :  { %521 = vmatpush2.bf16.msra.mxu0 %v1542_v60  ;;  %564 = vmatpush2.bf16.msra.mxu1 %v1543_v61  ;;  %v1631_v60 = vld [vmem:[#allocation6 + $0x1b0] ss:$8 sps:$4 sm:$0xff]   ;;  %v1636_v61 = vld [vmem:[#allocation6 + $0xa4] ss:$8 sps:$4 sm:$0xff]  }
  0x70   :  { %522 = vmatprep.subr.bf16.mxu0 %v1544_v62  ;;  %565 = vmatprep.subr.bf16.mxu1 %v1546_v63  ;;  %v1639_v62 = vld [vmem:[#allocation6 + $0x1a4] ss:$8 sps:$4 sm:$0xff]   ;;  %v1634_v63 = vld [vmem:[#allocation6 + $0xa0] ss:$8 sps:$4 sm:$0xff]  }
  0x73   :  { %523 = vmatpush2.bf16.msra.mxu0 %v1548_v0  ;;  %566 = vmatpush2.bf16.msra.mxu1 %v1549_v1  ;;  %v1637_v0 = vld [vmem:[#allocation6 + $0x1a0] ss:$8 sps:$4 sm:$0xff]   ;;  %v1642_v1 = vld [vmem:[#allocation6 + $0x94] ss:$8 sps:$4 sm:$0xff]  }
  0x74   :  { %524 = vmatprep.subr.bf16.mxu0 %v1550_v2  ;;  %567 = vmatprep.subr.bf16.mxu1 %v1552_v3  ;;  %v1645_v2 = vld [vmem:[#allocation6 + $0x194] ss:$8 sps:$4 sm:$0xff]   ;;  %v1640_v3 = vld [vmem:[#allocation6 + $0x90] ss:$8 sps:$4 sm:$0xff]  }
  0x77   :  { %525 = vmatpush2.bf16.msra.mxu0 %v1554_v4  ;;  %568 = vmatpush2.bf16.msra.mxu1 %v1555_v5  ;;  %v1643_v4 = vld [vmem:[#allocation6 + $0x190] ss:$8 sps:$4 sm:$0xff]   ;;  %v1648_v5 = vld [vmem:[#allocation6 + $0x84] ss:$8 sps:$4 sm:$0xff]  }
  0x78   :  { %989 = vmatprep.subr.bf16.mxu0 %v1558_v8  ;;  %1032 = vmatprep.subr.bf16.mxu1 %v1561_v9  ;;  %v1649_v8 = vld [vmem:[#allocation6 + $0x180] ss:$8 sps:$4 sm:$0xff]   ;;  %v1652_v9 = vld [vmem:[#allocation7 + $0x78] sm:$0xff]  }
  0x7a   :  { %527 = vmatmul.mubr.bf16.vlgmr.msra.gmra.mxu0 %v94_v10  ;;  %570 = vmatmul.mubr.bf16.vlgmr.msra.gmra.mxu1 %v94_v10  ;;  %v158_v10 = vlaneseq }
  0x7b   :  { %990 = vmatpush1.bf16.msra.mxu0 %v1556_v11  ;;  %1033 = vmatpush1.bf16.msra.mxu1 %v1559_v12 }
  0x7c   :  { %991 = vmatprep.subr.bf16.mxu0 %v1564_v13  ;;  %1034 = vmatprep.subr.bf16.mxu1 %v1567_v14  ;;  %v1836_v11 = vshrl.u32 %v158_v10, 7 }
  0x7e   :  { %v164_v12 = vsub.s32 1, %v1836_v11  ;;  %v172_v13 = vsub.s32 3, %v1836_v11  ;;  %v160_v14 = vsub.s32 0, %v1836_v11 }
  0x7f   :  { %992 = vmatpush1.bf16.msra.mxu0 %v1562_v15  ;;  %1035 = vmatpush1.bf16.msra.mxu1 %v1565_v16  ;;  %v168_v15 = vsub.s32 2, %v1836_v11  ;;  %v156_v16 = vld [vmem:[#allocation9] ss:$4 sm:$0xf] }
  0x80   :  { %993 = vmatprep.subr.bf16.mxu0 %v1570_v17  ;;  %1036 = vmatprep.subr.bf16.mxu1 %v1573_v18 }
  0x83   :  { %994 = vmatpush1.bf16.msra.mxu0 %v1568_v19  ;;  %1037 = vmatpush1.bf16.msra.mxu1 %v1571_v20  ;;  %v165_v19 = vrot.slane %v156_v16, %v164_v12  ;;  %v173_v20 = vrot.slane %v156_v16, %v172_v13 }
  0x84   :  { %995 = vmatprep.subr.bf16.mxu0 %v1576_v21  ;;  %1038 = vmatprep.subr.bf16.mxu1 %v1579_v22  ;;  %v161_v21 = vrot.slane %v156_v16, %v160_v14  ;;  %v169_v22 = vrot.slane %v156_v16, %v168_v15 }
  0x87   :  { %996 = vmatpush1.bf16.msra.mxu0 %v1574_v23  ;;  %1039 = vmatpush1.bf16.msra.mxu1 %v1577_v24 }
  0x88   :  { %997 = vmatprep.subr.bf16.mxu0 %v1582_v25  ;;  %1040 = vmatprep.subr.bf16.mxu1 %v1585_v26 }
  0x8b   :  { %998 = vmatpush1.bf16.msra.mxu0 %v1580_v27  ;;  %1041 = vmatpush1.bf16.msra.mxu1 %v1583_v28 }
  0x8c   :  { %999 = vmatprep.subr.bf16.mxu0 %v1588_v29  ;;  %1042 = vmatprep.subr.bf16.mxu1 %v1591_v30 }
  0x8f   :  { %1000 = vmatpush1.bf16.msra.mxu0 %v1586_v31  ;;  %1043 = vmatpush1.bf16.msra.mxu1 %v1589_v32 }
  0x90   :  { %1001 = vmatprep.subr.bf16.mxu0 %v1594_v33  ;;  %1044 = vmatprep.subr.bf16.mxu1 %v1597_v34 }
  0x93   :  { %1002 = vmatpush1.bf16.msra.mxu0 %v1592_v35  ;;  %1045 = vmatpush1.bf16.msra.mxu1 %v1595_v36 }
  0x94   :  { %1003 = vmatprep.subr.bf16.mxu0 %v1600_v37  ;;  %1046 = vmatprep.subr.bf16.mxu1 %v1603_v38 }
  0x97   :  { %1004 = vmatpush1.bf16.msra.mxu0 %v1598_v39  ;;  %1047 = vmatpush1.bf16.msra.mxu1 %v1601_v40 }
  0x98   :  { %1005 = vmatprep.subr.bf16.mxu0 %v1606_v41  ;;  %1048 = vmatprep.subr.bf16.mxu1 %v1609_v42 }
  0x9b   :  { %1006 = vmatpush2.bf16.msra.mxu0 %v1604_v43  ;;  %1049 = vmatpush2.bf16.msra.mxu1 %v1607_v44 }
  0x9c   :  { %1007 = vmatprep.subr.bf16.mxu0 %v1612_v45  ;;  %1050 = vmatprep.subr.bf16.mxu1 %v1615_v46 }
  0x9f   :  { %1008 = vmatpush2.bf16.msra.mxu0 %v1610_v47  ;;  %1051 = vmatpush2.bf16.msra.mxu1 %v1613_v48  ;;  %v1653_v47 = vld [vmem:[#allocation7 + $0x38] sm:$0xff]  }
  0xa0   :  { %1009 = vmatprep.subr.bf16.mxu0 %v1618_v49  ;;  %1052 = vmatprep.subr.bf16.mxu1 %v1621_v50  ;;  %v1654_v50 = vld [vmem:[#allocation7 + $0x70] sm:$0xff]  }
  0xa3   :  { %1010 = vmatpush2.bf16.msra.mxu0 %v1616_v51  ;;  %1053 = vmatpush2.bf16.msra.mxu1 %v1619_v52  ;;  %v1655_v51 = vld [vmem:[#allocation7 + $0x30] sm:$0xff]   ;;  %v1656_v52 = vld [vmem:[#allocation7 + $0x68] sm:$0xff]  }
  0xa4   :  { %1011 = vmatprep.subr.bf16.mxu0 %v1624_v53  ;;  %1054 = vmatprep.subr.bf16.mxu1 %v1627_v54  ;;  %v1657_v53 = vld [vmem:[#allocation7 + $0x28] sm:$0xff]   ;;  %v1658_v54 = vld [vmem:[#allocation7 + $0x60] sm:$0xff]  }
  0xa7   :  { %1012 = vmatpush2.bf16.msra.mxu0 %v1622_v55  ;;  %1055 = vmatpush2.bf16.msra.mxu1 %v1625_v56  ;;  %v1659_v55 = vld [vmem:[#allocation7 + $0x20] sm:$0xff]   ;;  %v1660_v56 = vld [vmem:[#allocation7 + $0x58] sm:$0xff]  }
  0xa8   :  { %1013 = vmatprep.subr.bf16.mxu0 %v1630_v57  ;;  %1056 = vmatprep.subr.bf16.mxu1 %v1633_v58  ;;  %v1661_v57 = vld [vmem:[#allocation7 + $0x18] sm:$0xff]   ;;  %v1662_v58 = vld [vmem:[#allocation7 + $0x50] sm:$0xff]  }
  0xab   :  { %1014 = vmatpush2.bf16.msra.mxu0 %v1628_v59  ;;  %1057 = vmatpush2.bf16.msra.mxu1 %v1631_v60  ;;  %v1663_v59 = vld [vmem:[#allocation7 + $0x10] sm:$0xff]   ;;  %v1664_v60 = vld [vmem:[#allocation7 + $0x48] sm:$0xff]  }
  0xac   :  { %1015 = vmatprep.subr.bf16.mxu0 %v1636_v61  ;;  %1058 = vmatprep.subr.bf16.mxu1 %v1639_v62  ;;  %v1665_v61 = vld [vmem:[#allocation7 + $0x8] sm:$0xff]   ;;  %v1666_v62 = vld [vmem:[#allocation7 + $0x40] sm:$0xff]  }
  0xaf   :  { %1016 = vmatpush2.bf16.msra.mxu0 %v1634_v63  ;;  %1059 = vmatpush2.bf16.msra.mxu1 %v1637_v0  ;;  %v1667_v63 = vld [vmem:[#allocation7] sm:$0xff]  }
  0xb0   :  { %1017 = vmatprep.subr.bf16.mxu0 %v1642_v1  ;;  %1060 = vmatprep.subr.bf16.mxu1 %v1645_v2  ;;  %v657_v0 = vld [vmem:[#allocation9 + $0x1] ss:$4 sm:$0x3] }
  0xb1   :  { %v666_v1 = vrot.slane %v657_v0, %v164_v12  ;;  %v662_v2 = vrot.slane %v657_v0, %v160_v14 }
  0xb3   :  { %1018 = vmatpush2.bf16.msra.mxu0 %v1640_v3  ;;  %1061 = vmatpush2.bf16.msra.mxu1 %v1643_v4 }
  0xb4   :  { %1019 = vmatprep.subr.bf16.mxu0 %v1648_v5  ;;  %1062 = vmatprep.subr.bf16.mxu1 %v1651_v6 }
  0xb7   :  { %1020 = vmatpush2.bf16.msra.mxu0 %v1646_v7  ;;  %1063 = vmatpush2.bf16.msra.mxu1 %v1649_v8 }
  0xb8   :  { %1432 = vmatprep.subr.bf16.mxu0 %v1652_v9 }
 0x13a   :  { %v528_v17 = vpop.f32.mrf.mxu0  ;;  %v571_v18 = vpop.f32.mrf.mxu1 }
 0x13b   :  { %v529_v31 = vadd.f32 %v528_v17, %v161_v21  ;;  %v572_v32 = vadd.f32 %v571_v18, %v169_v22 }
 0x13c   :  { %v530_v23 = vpop.f32.mrf.mxu0  ;;  %v573_v24 = vpop.f32.mrf.mxu1 }
 0x13d   :  { %v531_v27 = vadd.f32 %v530_v23, %v165_v19  ;;  %v574_v28 = vadd.f32 %v573_v24, %v173_v20  ;;  %v580_v43 = vmax.f32 %v529_v31, 0.0  ;;  %v582_v44 = vmax.f32 %v572_v32, 0.0  ;;  %v1430_v32 = vld [vmem:[%s1863_s4] ss:$0 sm:$0xff] }
 0x13e   :  { %v532_v25 = vpop.f32.mrf.mxu0  ;;  %v575_v26 = vpop.f32.mrf.mxu1 }
 0x13f   :  { %v533_v29 = vadd.f32 %v532_v25, %v161_v21  ;;  %v576_v30 = vadd.f32 %v575_v26, %v169_v22  ;;  %v581_v39 = vmax.f32 %v531_v27, 0.0  ;;  %v583_v40 = vmax.f32 %v574_v28, 0.0  ;;  %v1413_v27 = vld [vmem:[#allocation9 + $0x2] ss:$0 sm:$0xff] }
 0x140   :  { %v534_v33 = vpop.f32.mrf.mxu0  ;;  %v577_v34 = vpop.f32.mrf.mxu1 }
 0x141   :  { %v535_v35 = vadd.f32 %v534_v33, %v165_v19  ;;  %v578_v36 = vadd.f32 %v577_v34, %v173_v20  ;;  %v584_v37 = vmax.f32 %v533_v29, 0.0  ;;  %v586_v38 = vmax.f32 %v576_v30, 0.0 }
 0x143   :  { %v585_v41 = vmax.f32 %v535_v35, 0.0  ;;  %v587_v42 = vmax.f32 %v578_v36, 0.0  ;;  %v588_v48 = vpack.c.bf16 %v584_v37, %v580_v43  ;;  %v590_v49 = vpack.c.bf16 %v586_v38, %v582_v44 }
 0x145   :  { %v589_v45 = vpack.c.bf16 %v585_v41, %v581_v39  ;;  %v591_v46 = vpack.c.bf16 %v587_v42, %v583_v40  ;;  %v1431_v39 = vld [vmem:[#allocation9 + $0x3] ss:$0 sm:$0xff] }
 0x147   :  { %1021 = vmatprep.mubr.bf16.mxu0 %v589_v45  ;;  %1064 = vmatprep.mubr.bf16.mxu1 %v591_v46 }
 0x148   :  { %1022 = vmatmul.mubr.bf16.vlgmr.msra.gmra.mxu0 %v588_v48  ;;  %1065 = vmatmul.mubr.bf16.vlgmr.msra.gmra.mxu1 %v590_v49 }
 0x149   :  { %1433 = vmatpush3.bf16.msra.mxu0 %v1653_v47 }
 0x14a   :  { %1434 = vmatprep.subr.bf16.mxu0 %v1654_v50 }
 0x14d   :  { %1435 = vmatpush3.bf16.msra.mxu0 %v1655_v51 }
 0x14e   :  { %1436 = vmatprep.subr.bf16.mxu0 %v1656_v52 }
 0x151   :  { %1437 = vmatpush3.bf16.msra.mxu0 %v1657_v53 }
 0x152   :  { %1438 = vmatprep.subr.bf16.mxu0 %v1658_v54 }
 0x155   :  { %1439 = vmatpush3.bf16.msra.mxu0 %v1659_v55 }
 0x156   :  { %1440 = vmatprep.subr.bf16.mxu0 %v1660_v56 }
 0x159   :  { %1441 = vmatpush3.bf16.msra.mxu0 %v1661_v57 }
 0x15a   :  { %1442 = vmatprep.subr.bf16.mxu0 %v1662_v58 }
 0x15d   :  { %1443 = vmatpush3.bf16.msra.mxu0 %v1663_v59 }
 0x15e   :  { %1444 = vmatprep.subr.bf16.mxu0 %v1664_v60 }
 0x161   :  { %1445 = vmatpush3.bf16.msra.mxu0 %v1665_v61 }
 0x162   :  { %1446 = vmatprep.subr.bf16.mxu0 %v1666_v62 }
 0x165   :  { %1447 = vmatpush3.bf16.msra.mxu0 %v1667_v63 }
 0x208   :  { %v1023_v3 = vpop.f32.mrf.mxu0  ;;  %v1066_v4 = vpop.f32.mrf.mxu1 }
 0x209   :  { %v1024_v8 = vadd.f32 %v1023_v3, %v662_v2 }
 0x20a   :  { %v1025_v5 = vpop.f32.mrf.mxu0  ;;  %v1068_v6 = vpop.f32.mrf.mxu1 }
 0x20b   :  { %v1026_v7 = vadd.f32 %v1025_v5, %v666_v1  ;;  %v1067_v19 = vadd.f32 %v1066_v4, %v1024_v8 }
 0x20c   :  { %v1027_v9 = vpop.f32.mrf.mxu0  ;;  %v1070_v10 = vpop.f32.mrf.mxu1 }
 0x20d   :  { %v1028_v13 = vadd.f32 %v1027_v9, %v662_v2  ;;  %v1069_v16 = vadd.f32 %v1068_v6, %v1026_v7  ;;  %v1075_v14 = vmax.f32 %v1067_v19, 0.0 }
 0x20e   :  { %v1029_v15 = vpop.f32.mrf.mxu0  ;;  %v1072_v20 = vpop.f32.mrf.mxu1 }
 0x20f   :  { %v1071_v17 = vadd.f32 %v1070_v10, %v1028_v13  ;;  %v1030_v18 = vadd.f32 %v1029_v15, %v666_v1  ;;  %v1076_v22 = vmax.f32 %v1069_v16, 0.0 }
 0x211   :  { %v1073_v21 = vadd.f32 %v1072_v20, %v1030_v18  ;;  %v1077_v12 = vmax.f32 %v1071_v17, 0.0 }
 0x213   :  { %v1078_v11 = vmax.f32 %v1073_v21, 0.0  ;;  %v1079_v24 = vpack.c.bf16 %v1077_v12, %v1075_v14 }
 0x215   :  { %v1080_v23 = vpack.c.bf16 %v1078_v11, %v1076_v22 }
 0x217   :  { %1246 = vmatprep.mubr.bf16.mxu0 %v1080_v23 }
 0x218   :  { %1247 = vmatmul.mubr.bf16.vlgmr.msra.gmra.mxu0 %v1079_v24 }
 0x2d8   :  { %v1448_v25 = vpop.f32.mrf.mxu0 }
 0x2da   :  { %v1449_v26 = vpop.f32.mrf.mxu0 }
 0x2db   :  { %v1450_v28 = vadd.f32 %v1449_v26, %v1448_v25 }
 0x2dc   :  { %v1451_v29 = vpop.f32.mrf.mxu0 }
 0x2dd   :  { %v1249_v30 = vadd.f32 %v1450_v28, %v1413_v27 }
 0x2de   :  { %v1452_v31 = vpop.f32.mrf.mxu0 }
 0x2df   :  { %v1453_v33 = vadd.f32 %v1452_v31, %v1451_v29  ;;  %v1255_v34 = vmax.f32 %v1249_v30, 0.0 }
 0x2e1   :  { %v1252_v35 = vadd.f32 %v1453_v33, %v1413_v27  ;;  %v1264_v36 = vmul.f32 %v1430_v32, %v1255_v34 }
 0x2e3   :  { %v1256_v37 = vmax.f32 %v1252_v35, 0.0  ;;  %1266 = vadd.xlane.f32.xlu0 %v1264_v36 }
 0x2e5   :  { %v1265_v38 = vmul.f32 %v1430_v32, %v1256_v37 }
 0x2e7   :  { %1268 = vadd.xlane.f32.xlu0 %v1265_v38 }
 0x36c   :  { %v1267_v40 = vpop.xlane.xlu0 %1266 }
 0x36d   :  { %v1275_v41 = vadd.f32 %v1431_v39, %v1267_v40 }
 0x36f   :  { %1278 = vst.msk [vmem:[%s1865_s6] sm:$0xff] %vm1277_vm3, %v1275_v41 }
 0x370   :  { %v1269_v42 = vpop.xlane.xlu0 %1268 }
 0x371   :  { %v1276_v43 = vadd.f32 %v1431_v39, %v1269_v42 }
 0x373   :  { %1279 = vst.msk [vmem:[%s1865_s6 + $0x8] sm:$0xff] %vm1277_vm3, %v1276_v43 }
 0x374   :  { %1284 = vsyncpa [#allocation3], 1 }
 0x375   :  { %1285 = vsyncpa [#allocation5], 1 }
 0x376   :  { %1286 = vsyncpa [#allocation8], 1 }

</bundles_post_ra>
